<compile_context>
chip_gen: v7x
topology: tpu7x:2x2x1
jax: 0.10.0
libtpu: 0.0.40
codegen_flags: <defaults>
</compile_context>

<pallas_src>
import functools

import jax
import jax.numpy as jnp
import numpy as np
from jax.experimental import pallas as pl
from jax.experimental.pallas import tpu as pltpu


def _round_up(n, m):
    return (n + m - 1) // m * m


def structure_module_kernel(
    x_ref,      # (tm, E)   input row tile (caller dtype; cast in-kernel)
    w1t_ref,    # (E, Hp)   fc1 weight, pre-transposed, hidden zero-padded
    b1_ref,     # (1, Hp)   fc1 bias (zero-padded, f32)
    w2t_ref,    # (Hp, E)   fc2 weight, pre-transposed, hidden zero-padded
    b2_ref,     # (1, E)    fc2 bias (f32)
    g_ref,      # (1, E)    gamma * wd  (folded LayerNorm affine + distance w)
    c_ref,      # (1,) SMEM beta.wd + bd (folded scalar constant)
    out_ref,    # (1, tm)   lane-dense per-row distances
    *,
    compute_dtype,
):
    # In-kernel cast of x to the MXU operand dtype (bf16 on v5e/v6e/v7x):
    # avoids a separate wrapper-side HBM read+write pass over x.  f32 accum.
    xb = x_ref[...].astype(compute_dtype)
    h = jnp.dot(xb, w1t_ref[...], preferred_element_type=jnp.float32)
    h = jnp.maximum(h + b1_ref[...], 0.0)

    # fc2 (padded hidden columns are exactly zero -> contribute nothing).
    y = jnp.dot(h.astype(w2t_ref.dtype), w2t_ref[...],
                preferred_element_type=jnp.float32)
    y = y + b2_ref[...]

    # LayerNorm statistics (biased variance, eps = 1e-5), kept in f32 on the
    # VPU/EUP (do NOT lower this to bf16 -- v5e has no bf16 VPU/EUP).
    mu = jnp.mean(y, axis=-1, keepdims=True)
    yc = y - mu
    var = jnp.mean(yc * yc, axis=-1, keepdims=True)
    ycn = yc * jax.lax.rsqrt(var + 1e-5)            # (tm, E) normalized rows

    # Folded affine + distance projection: contracting E of g(1,E) with E of
    # ycn(tm,E) yields a lane-dense (1, tm) result directly.
    # TODO(synk): if the bundle shows the implicit ycn relayout on the shared
    # vex slot becoming the ceiling at large tm, switch to
    # d = jnp.sum(ycn * g, axis=-1) + one (tm,1)->(1,tm) relayout, or fold the
    # projection through fc2 (v = w2t @ g^T).
    d = jax.lax.dot_general(g_ref[...], ycn, (((1,), (1,)), ((), ())),
                            preferred_element_type=jnp.float32)

    # Dropout (inference/eval mode) = identity.
    out_ref[...] = (d + c_ref[0]).astype(out_ref.dtype)


def _vmem_budget_bytes():
    """Generation-aware scoped-VMEM budget (~48 MiB on 128 MiB parts,
    ~26 MiB on v7x's 64 MiB physical VMEM)."""
    try:
        cap = int(pltpu.get_tpu_info().vmem_capacity_bytes)
    except Exception:
        cap = 128 << 20
    return int(min(48 << 20, cap * 2 // 5))


def _vmem_estimate(tm, E, Hp, in_bytes, param_bufs):
    x_buf = 2 * tm * E * in_bytes                      # double-buffered x tile
    w_buf = param_bufs * (E * Hp + Hp * E) * in_bytes  # fc1/fc2 weights
    vec_buf = param_bufs * (Hp + 2 * E) * 4            # b1, b2, g
    inter = 4 * tm * max(E, Hp) * 4                    # h/y/ycn f32 live values
    out_buf = 2 * tm * 4
    return x_buf + w_buf + vec_buf + inter + out_buf


def _select_row_tile(M, E, Hp, in_bytes, tm_max, budget):
    if M < 128:
        return _round_up(max(M, 1), 8)
    if M <= 256:
        return 128
    # Aim for a grid of >= 2 so both TensorCores get fed on v7x (near-free on
    # single-TC v5e/v6e: one extra ~0.35us grid step), while using row tiles up
    # to tm_max to stay well above the per-step-overhead floor.
    tm = min(_round_up(tm_max, 128), _round_up(pl.cdiv(M, 2), 128))
    tm = max(tm, 128)
    while tm > 128 and _vmem_estimate(tm, E, Hp, in_bytes, 2) > budget:
        tm = max(128, _round_up(tm // 2, 128))
    return tm


def structure_module_forward(x, params, *, tm_max=2048, use_bf16=True):
    """x: (batch, seq, embed_dim) -> distances (batch, seq, 1) (eval mode).

    tm_max: max rows per grid step (sweepable up to 4096).
    use_bf16: run the two MXU dots on bf16 operands (f32 accumulation);
              LayerNorm / elementwise math always stays f32.
    """
    B, S, E = x.shape
    M = B * S
    H = params["w1"].shape[0]
    Hp = _round_up(H, 128)          # full MXU lane fill for the hidden dim

    compute_dtype = jnp.bfloat16 if use_bf16 else jnp.float32
    in_bytes = 2 if use_bf16 else 4

    budget = _vmem_budget_bytes()
    tm = _select_row_tile(M, E, Hp, in_bytes, tm_max, budget)
    grid = pl.cdiv(M, tm)
    Mp = grid * tm

    # No wrapper-side pad / astype passes over x: the reshape is a free
    # bitcast, the last row tile overhangs M (row-independent ops; overhang
    # output lanes are dropped below), and the bf16 cast happens in-kernel.
    x2d = x.reshape(M, E)

    # Pre-transpose / pre-cast the (small, read-once) weights outside the
    # kernel (PyTorch (out,in) -> (in,out)); zero-pad hidden dim to 128 lanes.
    w1t = params["w1"].T            # (E, H)
    w2t = params["w2"].T            # (H, E)
    b1 = params["b1"]
    if Hp != H:
        w1t = jnp.pad(w1t, ((0, 0), (0, Hp - H)))
        w2t = jnp.pad(w2t, ((0, Hp - H), (0, 0)))
        b1 = jnp.pad(b1, (0, Hp - H))
    w1t = w1t.astype(compute_dtype)
    w2t = w2t.astype(compute_dtype)
    b1 = b1.reshape(1, Hp).astype(jnp.float32)
    b2 = params["b2"].reshape(1, E).astype(jnp.float32)

    # Fold LayerNorm affine + distance layer:
    #   d = rstd * sum(yc * (gamma*wd)) + (beta . wd + bd)
    wd = params["wd"].reshape(-1)                              # (E,)
    g = (params["gamma"] * wd).reshape(1, E).astype(jnp.float32)
    c = (jnp.dot(params["beta"], wd) + params["bd"].reshape(())).reshape(1)
    c = c.astype(jnp.float32)

    est = _vmem_estimate(tm, E, Hp, in_bytes, 2)
    vmem_limit = int(min(budget, max(2 * est, 32 << 20)))

    kernel = functools.partial(structure_module_kernel,
                               compute_dtype=compute_dtype)

    def call(single_buffer_params):
        pkw = {}
        if single_buffer_params and hasattr(pl, "Buffered"):
            # Constant-index operands only need one VMEM buffer (DMA'd once);
            # matters at production E/H, especially on v7x's 64 MiB VMEM.
            pkw = dict(pipeline_mode=pl.Buffered(1))
        full = lambda i: (0, 0)   # parameters: same block every grid step
        in_specs = [
            # TODO(synk): sweep pl.Buffered(3) on this x spec on v7x.
            pl.BlockSpec((tm, E), lambda i: (i, 0)),            # x row tile
            pl.BlockSpec((E, Hp), full, **pkw),                 # fc1 weight
            pl.BlockSpec((1, Hp), full, **pkw),                 # fc1 bias
            pl.BlockSpec((Hp, E), full, **pkw),                 # fc2 weight
            pl.BlockSpec((1, E), full, **pkw),                  # fc2 bias
            pl.BlockSpec((1, E), full, **pkw),                  # gamma * wd
            pl.BlockSpec(memory_space=pltpu.MemorySpace.SMEM),  # scalar c
        ]
        return pl.pallas_call(
            kernel,
            out_shape=jax.ShapeDtypeStruct((1, Mp), jnp.float32),
            grid_spec=pltpu.PrefetchScalarGridSpec(
                num_scalar_prefetch=0,
                grid=(grid,),
                in_specs=in_specs,
                # Lane-dense output: step i writes lanes [i*tm, (i+1)*tm).
                out_specs=pl.BlockSpec((1, tm), lambda i: (0, i)),
            ),
            compiler_params=pltpu.CompilerParams(
                dimension_semantics=("parallel",),
                vmem_limit_bytes=vmem_limit,
            ),
        )(x2d, w1t, b1, w2t, b2, g, c)

    try:
        out_row = call(single_buffer_params=True)
    except Exception:
        # Older Pallas versions may reject pipeline_mode; fall back to the
        # default (double-buffered) parameter BlockSpecs.
        out_row = call(single_buffer_params=False)

    return out_row.reshape(Mp)[:M].reshape(B, S, 1)


def init_params(key, embed_dim, hidden_dim):
    """Deterministic synthetic params; PyTorch Linear weight shape (out, in)."""
    k1, k2, k3, k4, k5, k6 = jax.random.split(key, 6)
    s1 = 1.0 / np.sqrt(embed_dim)
    s2 = 1.0 / np.sqrt(hidden_dim)
    return {
        "w1": jax.random.uniform(k1, (hidden_dim, embed_dim), jnp.float32, -s1, s1),
        "b1": jax.random.uniform(k2, (hidden_dim,), jnp.float32, -s1, s1),
        "w2": jax.random.uniform(k3, (embed_dim, hidden_dim), jnp.float32, -s2, s2),
        "b2": jax.random.uniform(k4, (embed_dim,), jnp.float32, -s2, s2),
        "gamma": jnp.ones((embed_dim,), jnp.float32),
        "beta": jnp.zeros((embed_dim,), jnp.float32),
        "wd": jax.random.uniform(k5, (1, embed_dim), jnp.float32, -s1, s1),
        "bd": jax.random.uniform(k6, (1,), jnp.float32, -s1, s1),
    }


def reference_forward(x, p, *, matmul_dtype=None):
    """Pure-JAX reference mirroring the PyTorch module (eval mode).

    matmul_dtype (e.g. jnp.bfloat16) casts the two large matmul operands to
    mirror the kernel's in-kernel bf16 MXU path, keeping f32 accumulation and
    f32 LayerNorm math.
    """
    w1t, w2t = p["w1"].T, p["w2"].T
    xm = x
    if matmul_dtype is not None:
        xm, w1t = x.astype(matmul_dtype), w1t.astype(matmul_dtype)
    h = jnp.maximum(
        jnp.dot(xm, w1t, preferred_element_type=jnp.float32) + p["b1"], 0.0)
    hm = h
    if matmul_dtype is not None:
        hm, w2t = h.astype(matmul_dtype), w2t.astype(matmul_dtype)
    y = jnp.dot(hm, w2t, preferred_element_type=jnp.float32) + p["b2"]
    mu = jnp.mean(y, axis=-1, keepdims=True)
    var = jnp.mean((y - mu) ** 2, axis=-1, keepdims=True)
    yn = (y - mu) * jax.lax.rsqrt(var + 1e-5) * p["gamma"] + p["beta"]
    return jnp.dot(yn, p["wd"].T) + p["bd"]


if __name__ == "__main__":
    key = jax.random.PRNGKey(0)
    kx, kp, kx2 = jax.random.split(key, 3)

    # Small shapes consistent with the module's forward semantics.
    batch, seq = 2, 8
    embed_dim, hidden_dim = 128, 64
    params = init_params(kp, embed_dim, hidden_dim)

    x = jax.random.normal(kx, (batch, seq, embed_dim), jnp.float32)

    # f32 MXU path: exact check against the f32 reference.
    out_f32 = jax.block_until_ready(
        structure_module_forward(x, params, use_bf16=False))
    np.testing.assert_allclose(np.asarray(out_f32),
                               np.asarray(reference_forward(x, params)),
                               rtol=1e-4, atol=1e-4)
    assert out_f32.shape == (batch, seq, 1)

    # Default bf16 MXU path: compare against a bf16-matmul-matched reference.
    out_bf16 = jax.block_until_ready(structure_module_forward(x, params))
    np.testing.assert_allclose(
        np.asarray(out_bf16),
        np.asarray(reference_forward(x, params, matmul_dtype=jnp.bfloat16)),
        rtol=1e-2, atol=1e-2)
    assert out_bf16.shape == (batch, seq, 1)

    # Larger ragged case: exercises a multi-step grid (two 640-row tiles), the
    # overhanging last input tile (no wrapper-side padding), and the
    # lane-dense output path.
    x2 = jax.random.normal(kx2, (3, 400, embed_dim), jnp.float32)
    out2 = jax.block_until_ready(structure_module_forward(x2, params))
    np.testing.assert_allclose(
        np.asarray(out2),
        np.asarray(reference_forward(x2, params, matmul_dtype=jnp.bfloat16)),
        rtol=1e-2, atol=1e-2)
    assert out2.shape == (3, 400, 1)

    out2_f32 = jax.block_until_ready(
        structure_module_forward(x2, params, use_bf16=False))
    np.testing.assert_allclose(np.asarray(out2_f32),
                               np.asarray(reference_forward(x2, params)),
                               rtol=1e-4, atol=1e-4)

    print("KERNEL_OK")
</pallas_src>

<mosaic_0001>
module attributes {stable_mosaic.version = 11 : i64} {
  func.func @structure_module_kernel(%arg0: i32, %arg1: memref<16x128xf32, #tpu.memory_space<vmem>>, %arg2: memref<128x128xf32, #tpu.memory_space<vmem>>, %arg3: memref<1x128xf32, #tpu.memory_space<vmem>>, %arg4: memref<128x128xf32, #tpu.memory_space<vmem>>, %arg5: memref<1x128xf32, #tpu.memory_space<vmem>>, %arg6: memref<1x128xf32, #tpu.memory_space<vmem>>, %arg7: memref<1xf32, #tpu.memory_space<smem>>, %arg8: memref<1x16xf32, #tpu.memory_space<vmem>>) attributes {dimension_semantics = [#tpu.dimension_semantics<parallel>], iteration_bounds = array<i64: 1>, scalar_prefetch = 0 : i64, scratch_operands = 0 : i64, tpu.core_type = #tpu.core_type<tc>, window_params = [{transform_indices = @transform_0, window_bounds = array<i64: 16, 128>}, {pipeline_mode = #tpu.pipeline_mode<synchronous>, transform_indices = @transform_1, window_bounds = array<i64: 128, 128>}, {pipeline_mode = #tpu.pipeline_mode<synchronous>, transform_indices = @transform_2, window_bounds = array<i64: 1, 128>}, {pipeline_mode = #tpu.pipeline_mode<synchronous>, transform_indices = @transform_3, window_bounds = array<i64: 128, 128>}, {pipeline_mode = #tpu.pipeline_mode<synchronous>, transform_indices = @transform_4, window_bounds = array<i64: 1, 128>}, {pipeline_mode = #tpu.pipeline_mode<synchronous>, transform_indices = @transform_5, window_bounds = array<i64: 1, 128>}, {transform_indices = @transform_6, window_bounds = array<i64: 1>}, {transform_indices = @transform_7, window_bounds = array<i64: 1, 16>}]} {
    %c0 = arith.constant 0 : index
    %c0_0 = arith.constant 0 : index
    %0 = vector.load %arg1[%c0, %c0_0] : memref<16x128xf32, #tpu.memory_space<vmem>>, vector<16x128xf32>
    %c0_1 = arith.constant 0 : index
    %c0_2 = arith.constant 0 : index
    %1 = vector.load %arg2[%c0_1, %c0_2] : memref<128x128xf32, #tpu.memory_space<vmem>>, vector<128x128xf32>
    %cst = arith.constant dense<0.000000e+00> : vector<16x128xf32>
    %2 = tpu.matmul %0, %1, %cst {dimension_numbers = #tpu.dot_dimension_numbers<[1], [0], [0], [1], [0, 0, 1, 1], [], []>} : vector<16x128xf32>, vector<128x128xf32>, vector<16x128xf32> -> vector<16x128xf32>
    %c0_3 = arith.constant 0 : index
    %c0_4 = arith.constant 0 : index
    %3 = vector.load %arg3[%c0_3, %c0_4] : memref<1x128xf32, #tpu.memory_space<vmem>>, vector<1x128xf32>
    %4 = vector.broadcast %3 : vector<1x128xf32> to vector<16x128xf32>
    %5 = arith.addf %2, %4 : vector<16x128xf32>
    %cst_5 = arith.constant 0.000000e+00 : f32
    %6 = vector.broadcast %cst_5 : f32 to vector<16x128xf32>
    %7 = arith.maximumf %5, %6 : vector<16x128xf32>
    %c0_6 = arith.constant 0 : index
    %c0_7 = arith.constant 0 : index
    %8 = vector.load %arg4[%c0_6, %c0_7] : memref<128x128xf32, #tpu.memory_space<vmem>>, vector<128x128xf32>
    %cst_8 = arith.constant dense<0.000000e+00> : vector<16x128xf32>
    %9 = tpu.matmul %7, %8, %cst_8 {dimension_numbers = #tpu.dot_dimension_numbers<[1], [0], [0], [1], [0, 0, 1, 1], [], []>} : vector<16x128xf32>, vector<128x128xf32>, vector<16x128xf32> -> vector<16x128xf32>
    %c0_9 = arith.constant 0 : index
    %c0_10 = arith.constant 0 : index
    %10 = vector.load %arg5[%c0_9, %c0_10] : memref<1x128xf32, #tpu.memory_space<vmem>>, vector<1x128xf32>
    %11 = vector.broadcast %10 : vector<1x128xf32> to vector<16x128xf32>
    %12 = arith.addf %9, %11 : vector<16x128xf32>
    %cst_11 = arith.constant dense<0.000000e+00> : vector<16xf32>
    %13 = vector.multi_reduction <add>, %12, %cst_11 [1] : vector<16x128xf32> to vector<16xf32>
    %14 = vector.shape_cast %13 : vector<16xf32> to vector<16x1xf32>
    %cst_12 = arith.constant 1.280000e+02 : f32
    %15 = vector.broadcast %cst_12 : f32 to vector<16x1xf32>
    %16 = arith.divf %14, %15 : vector<16x1xf32>
    %17 = vector.broadcast %16 : vector<16x1xf32> to vector<16x128xf32>
    %18 = arith.subf %12, %17 : vector<16x128xf32>
    %19 = arith.mulf %18, %18 : vector<16x128xf32>
    %cst_13 = arith.constant dense<0.000000e+00> : vector<16xf32>
    %20 = vector.multi_reduction <add>, %19, %cst_13 [1] : vector<16x128xf32> to vector<16xf32>
    %21 = vector.shape_cast %20 : vector<16xf32> to vector<16x1xf32>
    %cst_14 = arith.constant 1.280000e+02 : f32
    %22 = vector.broadcast %cst_14 : f32 to vector<16x1xf32>
    %23 = arith.divf %21, %22 : vector<16x1xf32>
    %cst_15 = arith.constant 9.99999974E-6 : f32
    %24 = vector.broadcast %cst_15 : f32 to vector<16x1xf32>
    %25 = arith.addf %23, %24 : vector<16x1xf32>
    %26 = math.rsqrt %25 : vector<16x1xf32>
    %27 = vector.broadcast %26 : vector<16x1xf32> to vector<16x128xf32>
    %28 = arith.mulf %18, %27 : vector<16x128xf32>
    %c0_16 = arith.constant 0 : index
    %c0_17 = arith.constant 0 : index
    %29 = vector.load %arg6[%c0_16, %c0_17] : memref<1x128xf32, #tpu.memory_space<vmem>>, vector<1x128xf32>
    %cst_18 = arith.constant dense<0.000000e+00> : vector<1x16xf32>
    %30 = tpu.matmul %29, %28, %cst_18 {dimension_numbers = #tpu.dot_dimension_numbers<[1], [1], [0], [0], [0, 0, 1, 0], [], []>} : vector<1x128xf32>, vector<16x128xf32>, vector<1x16xf32> -> vector<1x16xf32>
    %c0_19 = arith.constant 0 : index
    %31 = memref.load %arg7[%c0_19] : memref<1xf32, #tpu.memory_space<smem>>
    %32 = vector.broadcast %31 : f32 to vector<1x16xf32>
    %33 = arith.addf %30, %32 : vector<1x16xf32>
    %c0_20 = arith.constant 0 : index
    %c0_21 = arith.constant 0 : index
    %34 = vector.load %arg8[%c0_20, %c0_21] : memref<1x16xf32, #tpu.memory_space<vmem>>, vector<1x16xf32>
    tpu.vector_store %arg8[%c0_20, %c0_21], %33 {strides = array<i32>} : memref<1x16xf32, #tpu.memory_space<vmem>>, vector<1x16xf32>,
    return
  }
  func.func @transform_0(%arg0: i32) -> (i32, i32) {
    %c0_i32 = arith.constant 0 : i32
    %c0_i32_0 = arith.constant 0 : i32
    return %arg0, %c0_i32 : i32, i32
  }
  func.func @transform_1(%arg0: i32) -> (i32, i32) {
    %c0_i32 = arith.constant 0 : i32
    %c0_i32_0 = arith.constant 0 : i32
    %c0_i32_1 = arith.constant 0 : i32
    return %c0_i32, %c0_i32_0 : i32, i32
  }
  func.func @transform_2(%arg0: i32) -> (i32, i32) {
    %c0_i32 = arith.constant 0 : i32
    %c0_i32_0 = arith.constant 0 : i32
    %c0_i32_1 = arith.constant 0 : i32
    return %c0_i32, %c0_i32_0 : i32, i32
  }
  func.func @transform_3(%arg0: i32) -> (i32, i32) {
    %c0_i32 = arith.constant 0 : i32
    %c0_i32_0 = arith.constant 0 : i32
    %c0_i32_1 = arith.constant 0 : i32
    return %c0_i32, %c0_i32_0 : i32, i32
  }
  func.func @transform_4(%arg0: i32) -> (i32, i32) {
    %c0_i32 = arith.constant 0 : i32
    %c0_i32_0 = arith.constant 0 : i32
    %c0_i32_1 = arith.constant 0 : i32
    return %c0_i32, %c0_i32_0 : i32, i32
  }
  func.func @transform_5(%arg0: i32) -> (i32, i32) {
    %c0_i32 = arith.constant 0 : i32
    %c0_i32_0 = arith.constant 0 : i32
    %c0_i32_1 = arith.constant 0 : i32
    return %c0_i32, %c0_i32_0 : i32, i32
  }
  func.func @transform_6(%arg0: i32) -> i32 {
    %c0_i32 = arith.constant 0 : i32
    %c0_i32_0 = arith.constant 0 : i32
    return %c0_i32 : i32
  }
  func.func @transform_7(%arg0: i32) -> (i32, i32) {
    %c0_i32 = arith.constant 0 : i32
    %c0_i32_0 = arith.constant 0 : i32
    return %c0_i32, %arg0 : i32, i32
  }
}

module attributes {stable_mosaic.version = 11 : i64} {
  func.func @structure_module_kernel(%arg0: i32, %arg1: memref<16x128xf32, #tpu.memory_space<vmem>>, %arg2: memref<128x128xf32, #tpu.memory_space<vmem>>, %arg3: memref<1x128xf32, #tpu.memory_space<vmem>>, %arg4: memref<128x128xf32, #tpu.memory_space<vmem>>, %arg5: memref<1x128xf32, #tpu.memory_space<vmem>>, %arg6: memref<1x128xf32, #tpu.memory_space<vmem>>, %arg7: memref<1xf32, #tpu.memory_space<smem>>, %arg8: memref<1x16xf32, #tpu.memory_space<vmem>>) attributes {dimension_semantics = [#tpu.dimension_semantics<parallel>], iteration_bounds = array<i64: 1>, scalar_prefetch = 0 : i64, scratch_operands = 0 : i64, tpu.core_type = #tpu.core_type<tc>, window_params = [{transform_indices = @transform_0, window_bounds = array<i64: 16, 128>}, {pipeline_mode = #tpu.pipeline_mode<synchronous>, transform_indices = @transform_1, window_bounds = array<i64: 128, 128>}, {pipeline_mode = #tpu.pipeline_mode<synchronous>, transform_indices = @transform_2, window_bounds = array<i64: 1, 128>}, {pipeline_mode = #tpu.pipeline_mode<synchronous>, transform_indices = @transform_3, window_bounds = array<i64: 128, 128>}, {pipeline_mode = #tpu.pipeline_mode<synchronous>, transform_indices = @transform_4, window_bounds = array<i64: 1, 128>}, {pipeline_mode = #tpu.pipeline_mode<synchronous>, transform_indices = @transform_5, window_bounds = array<i64: 1, 128>}, {transform_indices = @transform_6, window_bounds = array<i64: 1>}, {transform_indices = @transform_7, window_bounds = array<i64: 1, 16>}]} {
    %c0 = arith.constant 0 : index
    %c0_0 = arith.constant 0 : index
    %0 = vector.load %arg1[%c0, %c0_0] : memref<16x128xf32, #tpu.memory_space<vmem>>, vector<16x128xf32>
    %c0_1 = arith.constant 0 : index
    %c0_2 = arith.constant 0 : index
    %1 = vector.load %arg2[%c0_1, %c0_2] : memref<128x128xf32, #tpu.memory_space<vmem>>, vector<128x128xf32>
    %cst = arith.constant dense<0.000000e+00> : vector<16x128xf32>
    %2 = tpu.matmul %0, %1, %cst {dimension_numbers = #tpu.dot_dimension_numbers<[1], [0], [0], [1], [0, 0, 1, 1], [], []>} : vector<16x128xf32>, vector<128x128xf32>, vector<16x128xf32> -> vector<16x128xf32>
    %c0_3 = arith.constant 0 : index
    %c0_4 = arith.constant 0 : index
    %3 = vector.load %arg3[%c0_3, %c0_4] : memref<1x128xf32, #tpu.memory_space<vmem>>, vector<1x128xf32>
    %4 = vector.broadcast %3 : vector<1x128xf32> to vector<16x128xf32>
    %5 = arith.addf %2, %4 : vector<16x128xf32>
    %cst_5 = arith.constant 0.000000e+00 : f32
    %6 = vector.broadcast %cst_5 : f32 to vector<16x128xf32>
    %7 = arith.maximumf %5, %6 : vector<16x128xf32>
    %c0_6 = arith.constant 0 : index
    %c0_7 = arith.constant 0 : index
    %8 = vector.load %arg4[%c0_6, %c0_7] : memref<128x128xf32, #tpu.memory_space<vmem>>, vector<128x128xf32>
    %cst_8 = arith.constant dense<0.000000e+00> : vector<16x128xf32>
    %9 = tpu.matmul %7, %8, %cst_8 {dimension_numbers = #tpu.dot_dimension_numbers<[1], [0], [0], [1], [0, 0, 1, 1], [], []>} : vector<16x128xf32>, vector<128x128xf32>, vector<16x128xf32> -> vector<16x128xf32>
    %c0_9 = arith.constant 0 : index
    %c0_10 = arith.constant 0 : index
    %10 = vector.load %arg5[%c0_9, %c0_10] : memref<1x128xf32, #tpu.memory_space<vmem>>, vector<1x128xf32>
    %11 = vector.broadcast %10 : vector<1x128xf32> to vector<16x128xf32>
    %12 = arith.addf %9, %11 : vector<16x128xf32>
    %cst_11 = arith.constant dense<0.000000e+00> : vector<16xf32>
    %13 = vector.multi_reduction <add>, %12, %cst_11 [1] : vector<16x128xf32> to vector<16xf32>
    %14 = vector.shape_cast %13 : vector<16xf32> to vector<16x1xf32>
    %cst_12 = arith.constant 1.280000e+02 : f32
    %15 = vector.broadcast %cst_12 : f32 to vector<16x1xf32>
    %16 = arith.divf %14, %15 : vector<16x1xf32>
    %17 = vector.broadcast %16 : vector<16x1xf32> to vector<16x128xf32>
    %18 = arith.subf %12, %17 : vector<16x128xf32>
    %19 = arith.mulf %18, %18 : vector<16x128xf32>
    %cst_13 = arith.constant dense<0.000000e+00> : vector<16xf32>
    %20 = vector.multi_reduction <add>, %19, %cst_13 [1] : vector<16x128xf32> to vector<16xf32>
    %21 = vector.shape_cast %20 : vector<16xf32> to vector<16x1xf32>
    %cst_14 = arith.constant 1.280000e+02 : f32
    %22 = vector.broadcast %cst_14 : f32 to vector<16x1xf32>
    %23 = arith.divf %21, %22 : vector<16x1xf32>
    %cst_15 = arith.constant 9.99999974E-6 : f32
    %24 = vector.broadcast %cst_15 : f32 to vector<16x1xf32>
    %25 = arith.addf %23, %24 : vector<16x1xf32>
    %26 = math.rsqrt %25 : vector<16x1xf32>
    %27 = vector.broadcast %26 : vector<16x1xf32> to vector<16x128xf32>
    %28 = arith.mulf %18, %27 : vector<16x128xf32>
    %c0_16 = arith.constant 0 : index
    %c0_17 = arith.constant 0 : index
    %29 = vector.load %arg6[%c0_16, %c0_17] : memref<1x128xf32, #tpu.memory_space<vmem>>, vector<1x128xf32>
    %cst_18 = arith.constant dense<0.000000e+00> : vector<1x16xf32>
    %30 = tpu.matmul %29, %28, %cst_18 {dimension_numbers = #tpu.dot_dimension_numbers<[1], [1], [0], [0], [0, 0, 1, 0], [], []>} : vector<1x128xf32>, vector<16x128xf32>, vector<1x16xf32> -> vector<1x16xf32>
    %c0_19 = arith.constant 0 : index
    %31 = memref.load %arg7[%c0_19] : memref<1xf32, #tpu.memory_space<smem>>
    %32 = vector.broadcast %31 : f32 to vector<1x16xf32>
    %33 = arith.addf %30, %32 : vector<1x16xf32>
    %c0_20 = arith.constant 0 : index
    %c0_21 = arith.constant 0 : index
    %34 = vector.load %arg8[%c0_20, %c0_21] : memref<1x16xf32, #tpu.memory_space<vmem>>, vector<1x16xf32>
    tpu.vector_store %arg8[%c0_20, %c0_21], %33 {strides = array<i32>} : memref<1x16xf32, #tpu.memory_space<vmem>>, vector<1x16xf32>,
    return
  }
  func.func @transform_0(%arg0: i32) -> (i32, i32) {
    %c0_i32 = arith.constant 0 : i32
    %c0_i32_0 = arith.constant 0 : i32
    return %arg0, %c0_i32 : i32, i32
  }
  func.func @transform_1(%arg0: i32) -> (i32, i32) {
    %c0_i32 = arith.constant 0 : i32
    %c0_i32_0 = arith.constant 0 : i32
    %c0_i32_1 = arith.constant 0 : i32
    return %c0_i32, %c0_i32_0 : i32, i32
  }
  func.func @transform_2(%arg0: i32) -> (i32, i32) {
    %c0_i32 = arith.constant 0 : i32
    %c0_i32_0 = arith.constant 0 : i32
    %c0_i32_1 = arith.constant 0 : i32
    return %c0_i32, %c0_i32_0 : i32, i32
  }
  func.func @transform_3(%arg0: i32) -> (i32, i32) {
    %c0_i32 = arith.constant 0 : i32
    %c0_i32_0 = arith.constant 0 : i32
    %c0_i32_1 = arith.constant 0 : i32
    return %c0_i32, %c0_i32_0 : i32, i32
  }
  func.func @transform_4(%arg0: i32) -> (i32, i32) {
    %c0_i32 = arith.constant 0 : i32
    %c0_i32_0 = arith.constant 0 : i32
    %c0_i32_1 = arith.constant 0 : i32
    return %c0_i32, %c0_i32_0 : i32, i32
  }
  func.func @transform_5(%arg0: i32) -> (i32, i32) {
    %c0_i32 = arith.constant 0 : i32
    %c0_i32_0 = arith.constant 0 : i32
    %c0_i32_1 = arith.constant 0 : i32
    return %c0_i32, %c0_i32_0 : i32, i32
  }
  func.func @transform_6(%arg0: i32) -> i32 {
    %c0_i32 = arith.constant 0 : i32
    %c0_i32_0 = arith.constant 0 : i32
    return %c0_i32 : i32
  }
  func.func @transform_7(%arg0: i32) -> (i32, i32) {
    %c0_i32 = arith.constant 0 : i32
    %c0_i32_0 = arith.constant 0 : i32
    return %c0_i32, %arg0 : i32, i32
  }
}

</mosaic_0001>

<bundles_post_ra>
// kernel: tpu_custom_call.1
= control target key start
LH: loop header
LB: loop body
LE: loop exit
PB: predicated region body
PF: predicated region fallthrough
CT: control target
= control target key end

     0   :  { %13 = vsyncpa [#allocation4], 0  ;;  %s800_s0 = inlined_call_operand.hbm [shape: f32[16,128], index: 0, kind: input, shape index: {}]   ;;  %s801_s1 = inlined_call_operand.hbm [shape: f32[128,128], index: 1, kind: input, shape index: {}]   ;;  %s802_s2 = inlined_call_operand.vmem [shape: f32[1,128], index: 2, kind: input, shape index: {}]   ;;  %s803_s3 = inlined_call_operand.hbm [shape: f32[128,128], index: 3, kind: input, shape index: {}]   ;;  %s804_s4 = inlined_call_operand.vmem [shape: f32[1,128], index: 4, kind: input, shape index: {}]   ;;  %s805_s5 = inlined_call_operand.vmem [shape: f32[1,128], index: 5, kind: input, shape index: {}]   ;;  %s806_s6 = inlined_call_operand.<no memory space> [shape: f32[1], index: 6, kind: input, shape index: {}]   ;;  %s807_s7 = inlined_call_operand.hbm [shape: f32[1,16], index: 7, kind: output, shape index: {}]  }
   0x1   :  { %14 = vsyncpa [#allocation7], 0 }
   0x2   :  { %15 = vsyncpa [#allocation5], 0  ;;  %s675_s24 = smov [#allocation6]   ;;  %s676_s26 = smov [#allocation3]  }
   0x3   :  { %s33_s25 = sshll.u32 %s675_s24, 4  ;;  %s21_s27 = sshll.u32 %s676_s26, 4  ;;  %s34_s25 = int_to_ptr.vmem [resolvable:$true] %s33_s25  ;;  %s724_s27 = int_to_ptr.vmem [resolvable:$true] %s21_s27 }
   0x4   :  { %s581_s30 = scalar_lea.hbm %s801_s1, 2048 }
   0x5   :  { %p582_p0 = scmp.ne.s32.totalorder %s801_s1, %s581_s30  ;;  %p585_p1 = scmp.lt.u32.totalorder %s581_s30, %s801_s1 }
   0x7   :  { %p587_p2 = pnand %p585_p1, %p582_p0 }
   0x9   :  { %590 = shalt.err (!%p587_p2)
}
   0xa   :  { %s591_s12 = scalar_lea.vmem %s34_s25, 2048  ;;  %p596_p4 = scmp.lt.s32.totalorder %s34_s25, %s34_s25 }
   0xb   :  { %p592_p3 = scmp.ne.s32.totalorder %s34_s25, %s591_s12  ;;  %p597_p5 = scmp.lt.s32.totalorder %s591_s12, %s591_s12 }
   0xd   :  { %p598_p6 = por %p597_p5, %p596_p4 }
   0xf   :  { %p599_p7 = pnand %p598_p6, %p592_p3 }
  0x11   :  { %602 = shalt.err (!%p599_p7)
}
  0x12   :  { %s677_s13 = smov 128   ;;  %s678_s14 = smov 8  }
  0x13   :  { %39 = dma.hbm_to_vmem [thread:$0]  %s801_s1, 2048, %s34_s25, [#allocation7], %s677_s13, %s677_s13, %s678_s14  }
  0x14   :  { %s603_s19 = scalar_lea.hbm %s800_s0, 256 }
  0x15   :  { %p604_p8 = scmp.ne.s32.totalorder %s800_s0, %s603_s19  ;;  %p607_p9 = scmp.lt.u32.totalorder %s603_s19, %s800_s0 }
  0x17   :  { %p609_p10 = pnand %p607_p9, %p604_p8 }
  0x19   :  { %612 = shalt.err (!%p609_p10)
}
  0x1a   :  { %s613_s24 = scalar_lea.vmem %s724_s27, 256  ;;  %p618_p12 = scmp.lt.s32.totalorder %s724_s27, %s724_s27 }
  0x1b   :  { %p614_p11 = scmp.ne.s32.totalorder %s724_s27, %s613_s24  ;;  %p619_p13 = scmp.lt.s32.totalorder %s613_s24, %s613_s24 }
  0x1d   :  { %p620_p0 = por %p619_p13, %p618_p12 }
  0x1f   :  { %p621_p1 = pnand %p620_p0, %p614_p11 }
  0x21   :  { %624 = shalt.err (!%p621_p1)
}
  0x22   :  { %27 = dma.hbm_to_vmem [thread:$0]  %s800_s0, 256, %s724_s27, [#allocation4], %s677_s13, %s677_s13, %s678_s14  }
  0x23   :  { %s679_s26 = smov [#allocation8]   ;;  %s625_s8 = scalar_lea.hbm %s803_s3, 2048 }
  0x24   :  { %s47_s28 = sshll.u32 %s679_s26, 4  ;;  %p626_p2 = scmp.ne.s32.totalorder %s803_s3, %s625_s8  ;;  %s48_s28 = int_to_ptr.vmem [resolvable:$true] %s47_s28 }
  0x25   :  { %p629_p3 = scmp.lt.u32.totalorder %s625_s8, %s803_s3 }
  0x27   :  { %p631_p4 = pnand %p629_p3, %p626_p2 }
  0x29   :  { %634 = shalt.err (!%p631_p4)
}
  0x2a   :  { %s635_s15 = scalar_lea.vmem %s48_s28, 2048  ;;  %p640_p6 = scmp.lt.s32.totalorder %s48_s28, %s48_s28 }
  0x2b   :  { %p636_p5 = scmp.ne.s32.totalorder %s48_s28, %s635_s15  ;;  %p641_p7 = scmp.lt.s32.totalorder %s635_s15, %s635_s15 }
  0x2d   :  { %p642_p8 = por %p641_p7, %p640_p6 }
  0x2f   :  { %p643_p9 = pnand %p642_p8, %p636_p5 }
  0x31   :  { %646 = shalt.err (!%p643_p9)
}
  0x32   :  { %53 = dma.hbm_to_vmem [thread:$0]  %s803_s3, 2048, %s48_s28, [#allocation7], %s677_s13, %s677_s13, %s678_s14  }
  0x33   :  { %669 = dma.done.wait [#allocation4], 256  }
  0x34   :  { %670 = vsyncadd [#allocation4], 4294967040 }
  0x35   :  { %671 = dma.done.wait [#allocation7], 4096  }
  0x36   :  { %672 = vsyncadd [#allocation7], 4294963200  ;;  %v71_v0 = vld [vmem:[#allocation6] sm:$0xff]  ;;  %v72_v1 = vld [vmem:[#allocation6 + $0x8] sm:$0xff]  ;;  %vm681_vm0 = vmmov 0   ;;  %s683_s19 = smov [#allocation9]  }
  0x37   :  { %v73_v2 = vld [vmem:[#allocation6 + $0x10] sm:$0xff]  ;;  %v501_v3 = vpack.c.bf16 %v72_v1, %v71_v0  ;;  %v74_v4 = vld [vmem:[#allocation6 + $0x18] sm:$0xff]  ;;  %v75_v6 = vld [vmem:[#allocation6 + $0x20] sm:$0xff]  ;;  %s373_s20 = sshll.u32 %s683_s19, 4  ;;  %vm365_vm1 = vcmask 122880   ;;  %s374_s20 = int_to_ptr.vmem [resolvable:$true] %s373_s20 }
  0x38   :  { %v505_v5 = vpack.c.bf16 %v74_v4, %v73_v2  ;;  %v76_v7 = vld [vmem:[#allocation6 + $0x28] sm:$0xff]  ;;  %v77_v9 = vld [vmem:[#allocation6 + $0x30] sm:$0xff]  ;;  %v78_v10 = vld [vmem:[#allocation6 + $0x38] sm:$0xff]  ;;  %s647_s21 = scalar_lea.vmem %s374_s20, 16  ;;  %s651_s22 = scalar_lea.vmem %s374_s20, 32 }
  0x39   :  { %502 = vmatprep.subr.bf16.mxu0 %v501_v3  ;;  %v509_v8 = vpack.c.bf16 %v76_v7, %v75_v6  ;;  %v69_v11 = vld [vmem:[#allocation3] sm:$0xff]  ;;  %v171_v12 = vld [vmem:[#allocation8] sm:$0xff]  ;;  %v172_v13 = vld [vmem:[#allocation8 + $0x8] sm:$0xff]  ;;  %v513_v20 = vpack.c.bf16 %v78_v10, %v77_v9  ;;  %v680_v6 = vmov 0.0|0.0   ;;  %v682_v7 = vmov 0.0   ;;  %p648_p10 = scmp.ne.s32.totalorder %s374_s20, %s647_s21  ;;  %p652_p11 = scmp.lt.s32.totalorder %s374_s20, %s374_s20 }
  0x3a   :  { %504 = vmatpush3.bf16.msra.mxu0 %v501_v3  ;;  %456 = vmatprep.mubr.f32.mxu0 %v69_v11  ;;  %v173_v14 = vld [vmem:[#allocation8 + $0x10] sm:$0xff]  ;;  %v533_v15 = vpack.c.bf16 %v172_v13, %v171_v12  ;;  %v174_v16 = vld [vmem:[#allocation8 + $0x18] sm:$0xff]  ;;  %v175_v18 = vld [vmem:[#allocation8 + $0x20] sm:$0xff]  ;;  %p653_p12 = scmp.lt.s32.totalorder %s651_s22, %s647_s21 }
  0x3b   :  { %506 = vmatprep.subr.bf16.mxu0 %v505_v5  ;;  %v537_v17 = vpack.c.bf16 %v174_v16, %v173_v14  ;;  %v176_v19 = vld [vmem:[#allocation8 + $0x28] sm:$0xff]  ;;  %v79_v21 = vld [vmem:[#allocation6 + $0x40] sm:$0xff]  ;;  %v177_v24 = vld [vmem:[#allocation8 + $0x30] sm:$0xff] }
  0x3c   :  { %534 = vmatprep.subr.bf16.mxu1 %v533_v15  ;;  %v80_v22 = vld [vmem:[#allocation6 + $0x48] sm:$0xff]  ;;  %v541_v23 = vpack.c.bf16 %v176_v19, %v175_v18  ;;  %v178_v25 = vld [vmem:[#allocation8 + $0x38] sm:$0xff]  ;;  %v81_v27 = vld [vmem:[#allocation6 + $0x50] sm:$0xff]  ;;  %p654_p13 = por %p653_p12, %p652_p11 }
  0x3d   :  { %536 = vmatpush3.bf16.msra.mxu1 %v533_v15  ;;  %v517_v26 = vpack.c.bf16 %v80_v22, %v79_v21  ;;  %v82_v28 = vld [vmem:[#allocation6 + $0x58] sm:$0xff]  ;;  %v545_v29 = vpack.c.bf16 %v178_v25, %v177_v24  ;;  %v179_v30 = vld [vmem:[#allocation8 + $0x40] sm:$0xff]  ;;  %v180_v31 = vld [vmem:[#allocation8 + $0x48] sm:$0xff] }
  0x3e   :  { %508 = vmatpush3.bf16.msra.mxu0 %v505_v5  ;;  %538 = vmatprep.subr.bf16.mxu1 %v537_v17  ;;  %v521_v32 = vpack.c.bf16 %v82_v28, %v81_v27  ;;  %v83_v33 = vld [vmem:[#allocation6 + $0x60] sm:$0xff]  ;;  %v84_v34 = vld [vmem:[#allocation6 + $0x68] sm:$0xff]  ;;  %v549_v35 = vpack.c.bf16 %v180_v31, %v179_v30  ;;  %v181_v36 = vld [vmem:[#allocation8 + $0x50] sm:$0xff]  ;;  %p655_p0 = pnand %p654_p13, %p648_p10 }
  0x3f   :  { %510 = vmatprep.subr.bf16.mxu0 %v509_v8  ;;  %v182_v37 = vld [vmem:[#allocation8 + $0x58] sm:$0xff]  ;;  %v525_v38 = vpack.c.bf16 %v84_v34, %v83_v33  ;;  %v85_v39 = vld [vmem:[#allocation6 + $0x70] sm:$0xff]  ;;  %v183_v42 = vld [vmem:[#allocation8 + $0x60] sm:$0xff] }
  0x40   :  { %v86_v40 = vld [vmem:[#allocation6 + $0x78] sm:$0xff]  ;;  %v553_v41 = vpack.c.bf16 %v182_v37, %v181_v36  ;;  %v184_v43 = vld [vmem:[#allocation8 + $0x68] sm:$0xff]  ;;  %v185_v47 = vld [vmem:[#allocation8 + $0x70] sm:$0xff] }
  0x41   :  { %540 = vmatpush3.bf16.msra.mxu1 %v537_v17  ;;  %v529_v44 = vpack.c.bf16 %v86_v40, %v85_v39  ;;  %v557_v45 = vpack.c.bf16 %v184_v43, %v183_v42  ;;  %v70_v46 = vld [vmem:[#allocation3 + $0x8] sm:$0xff]  ;;  %v383_v50 = vld [vmem:[%s802_s2] ss:$0 sm:$0xff] }
  0x42   :  { %512 = vmatpush3.bf16.msra.mxu0 %v509_v8  ;;  %542 = vmatprep.subr.bf16.mxu1 %v541_v23  ;;  %v186_v48 = vld [vmem:[#allocation8 + $0x78] sm:$0xff]  ;;  %v384_v57 = vld [vmem:[%s804_s4] ss:$0 sm:$0xff] }
  0x43   :  { %514 = vmatprep.subr.bf16.mxu0 %v513_v20  ;;  %v561_v49 = vpack.c.bf16 %v186_v48, %v185_v47  ;;  %v292_v19 = vld [vmem:[%s805_s5] sm:$0x1] }
  0x45   :  { %544 = vmatpush3.bf16.msra.mxu1 %v541_v23 }
  0x46   :  { %516 = vmatpush3.bf16.msra.mxu0 %v513_v20  ;;  %546 = vmatprep.subr.bf16.mxu1 %v545_v29  ;;  %v294_v20 = vstv %s806_s6 }
  0x47   :  { %518 = vmatprep.subr.bf16.mxu0 %v517_v26 }
  0x49   :  { %548 = vmatpush3.bf16.msra.mxu1 %v545_v29 }
  0x4a   :  { %520 = vmatpush3.bf16.msra.mxu0 %v517_v26  ;;  %550 = vmatprep.subr.bf16.mxu1 %v549_v35 }
  0x4b   :  { %522 = vmatprep.subr.bf16.mxu0 %v521_v32 }
  0x4d   :  { %552 = vmatpush3.bf16.msra.mxu1 %v549_v35 }
  0x4e   :  { %524 = vmatpush3.bf16.msra.mxu0 %v521_v32  ;;  %554 = vmatprep.subr.bf16.mxu1 %v553_v41 }
  0x4f   :  { %526 = vmatprep.subr.bf16.mxu0 %v525_v38 }
  0x51   :  { %556 = vmatpush3.bf16.msra.mxu1 %v553_v41 }
  0x52   :  { %528 = vmatpush3.bf16.msra.mxu0 %v525_v38  ;;  %558 = vmatprep.subr.bf16.mxu1 %v557_v45 }
  0x53   :  { %530 = vmatprep.subr.bf16.mxu0 %v529_v44 }
  0x55   :  { %560 = vmatpush3.bf16.msra.mxu1 %v557_v45 }
  0x56   :  { %532 = vmatpush3.bf16.msra.mxu0 %v529_v44  ;;  %562 = vmatprep.subr.bf16.mxu1 %v561_v49 }
  0x57   :  { %565 = vmatprep.subr.bf16.mxu0 %v680_v6 }
  0x59   :  { %457 = vmatmul.mubr.f32.vlgmr.msra.gmra.mrb[0].mxu0 %v70_v46  ;;  %564 = vmatpush3.bf16.msra.mxu1 %v561_v49 }
  0x5a   :  { %498 = vmatprep.mubr.msk.f32.mxu0 %vm681_vm0, %v682_v7 }
 0x12c   :  { %v458_v51 = vpop.f32.mrb[0].mxu0 }
 0x12d   :  { %v166_v52 = vadd.f32 %v458_v51, %v383_v50  ;;  %v160_v53 = vpop.f32.mrb[1].mxu0 }
 0x12e   :  { %v161_v54 = vadd.f32 %v383_v50, %v160_v53 }
 0x12f   :  { %v170_v56 = vmax.f32 %v166_v52, 0.0 }
 0x130   :  { %v169_v55 = vmax.f32 %v161_v54, 0.0 }
 0x132   :  { %491 = vmatprep.mubr.f32.mxu1 %v169_v55 }
 0x133   :  { %492 = vmatmul.mubr.f32.vlgmr.msra.gmra.mrb[0].mxu1 %v170_v56 }
 0x206   :  { %v493_v58 = vpop.f32.mrb[0].mxu1 }
 0x207   :  { %v260_v59 = vpop.f32.mrb[1].mxu1  ;;  %v266_v61 = vadd.f32 %v493_v58, %v384_v57 }
 0x208   :  { %v261_v60 = vadd.f32 %v384_v57, %v260_v59 }
 0x20a   :  { %269 = vadd.xlane.f32.xlu0 %v261_v60 }
 0x20e   :  { %271 = vadd.xlane.f32.xlu0 %v266_v61 }
 0x297   :  { %v270_v62 = vpop.xlane.xlu0 %269 }
 0x298   :  { %v274_v63 = vmul.f32 0.0078125, %v270_v62 }
 0x29a   :  { %v276_v0 = vsub.f32 %v261_v60, %v274_v63 }
 0x29b   :  { %v272_v1 = vpop.xlane.xlu0 %271 }
 0x29c   :  { %v275_v2 = vmul.f32 0.0078125, %v272_v1  ;;  %v278_v3 = vmul.f32 %v276_v0, %v276_v0 }
 0x29e   :  { %v277_v4 = vsub.f32 %v266_v61, %v275_v2  ;;  %280 = vadd.xlane.f32.xlu1 %v278_v3 }
 0x2a0   :  { %v279_v5 = vmul.f32 %v277_v4, %v277_v4 }
 0x2a2   :  { %282 = vadd.xlane.f32.xlu1 %v279_v5 }
 0x32b   :  { %v281_v8 = vpop.xlane.xlu1 %280 }
 0x32c   :  { %v284_v9 = vmul.f32 0.0078125, %v281_v8 }
 0x32e   :  { %v286_v10 = vadd.f32 1e-05, %v284_v9 }
 0x32f   :  { %v283_v11 = vpop.xlane.xlu1 %282 }
 0x330   :  { %v285_v12 = vmul.f32 0.0078125, %v283_v11  ;;  %577 = vrsqrt.f32 %v286_v10 }
 0x332   :  { %v287_v13 = vadd.f32 1e-05, %v285_v12 }
 0x334   :  { %579 = vrsqrt.f32 %v287_v13 }
 0x33a   :  { %v578_v14 = vpop.eup %577 }
 0x33b   :  { %v290_v16 = vmul.f32 %v578_v14, %v276_v0 }
 0x33e   :  { %v580_v15 = vpop.eup %579 }
 0x33f   :  { %v291_v17 = vmul.f32 %v580_v15, %v277_v4 }
 0x341   :  { %v566_v18 = vpack.c.bf16 %v291_v17, %v290_v16 }
 0x343   :  { %567 = vmatpush3.bf16.xpose.msra.mxu0 %v566_v18 }
 0x34a   :  { %499 = vmatmul.mubr.f32.vlgmr.msra.gmra.mrb[2].mxu0 %v292_v19 }
 0x41d   :  { %v361_v21 = vpop.f32.mrb[2].mxu0 }
 0x41e   :  { %v362_v22 = vadd.f32 %v361_v21, %v294_v20  ;;  %v500_v23 = vpop.f32.mrb[3].mxu0 }
 0x420   :  { %366 = vst.msk [vmem:[#allocation9] sm:$0x1] %vm365_vm1, %v362_v22 }
 0x421   :  { %658 = shalt.err (!%p655_p0)
}
 0x422   :  { %s659_s6 = scalar_lea.hbm %s807_s7, 16 }
 0x423   :  { %p660_p1 = scmp.ne.s32.totalorder %s807_s7, %s659_s6  ;;  %p663_p2 = scmp.lt.u32.totalorder %s659_s6, %s807_s7 }
 0x425   :  { %p665_p3 = pnand %p663_p2, %p660_p1 }
 0x427   :  { %668 = shalt.err (!%p665_p3)
}
 0x428   :  { %376 = dma.vmem_to_hbm [thread:$0]  %s374_s20, 16, %s807_s7, [#allocation5]  }
 0x429   :  { %673 = dma.done.wait [#allocation5], 16  }
 0x42a   :  { %674 = vsyncadd [#allocation5], 4294967280 }
 0x42b   :  { %380 = vsyncpa [#allocation4], 1 }
 0x42c   :  { %381 = vsyncpa [#allocation7], 1 }
 0x42d   :  { %382 = vsyncpa [#allocation5], 1 }

// kernel: tpu_custom_call.1
= control target key start
LH: loop header
LB: loop body
LE: loop exit
PB: predicated region body
PF: predicated region fallthrough
CT: control target
= control target key end

     0   :  { %13 = vsyncpa [#allocation4], 0  ;;  %s800_s0 = inlined_call_operand.hbm [shape: f32[16,128], index: 0, kind: input, shape index: {}]   ;;  %s801_s1 = inlined_call_operand.hbm [shape: f32[128,128], index: 1, kind: input, shape index: {}]   ;;  %s802_s2 = inlined_call_operand.vmem [shape: f32[1,128], index: 2, kind: input, shape index: {}]   ;;  %s803_s3 = inlined_call_operand.hbm [shape: f32[128,128], index: 3, kind: input, shape index: {}]   ;;  %s804_s4 = inlined_call_operand.vmem [shape: f32[1,128], index: 4, kind: input, shape index: {}]   ;;  %s805_s5 = inlined_call_operand.vmem [shape: f32[1,128], index: 5, kind: input, shape index: {}]   ;;  %s806_s6 = inlined_call_operand.<no memory space> [shape: f32[1], index: 6, kind: input, shape index: {}]   ;;  %s807_s7 = inlined_call_operand.hbm [shape: f32[1,16], index: 7, kind: output, shape index: {}]  }
   0x1   :  { %14 = vsyncpa [#allocation7], 0 }
   0x2   :  { %15 = vsyncpa [#allocation5], 0  ;;  %s675_s24 = smov [#allocation6]   ;;  %s676_s26 = smov [#allocation3]  }
   0x3   :  { %s33_s25 = sshll.u32 %s675_s24, 4  ;;  %s21_s27 = sshll.u32 %s676_s26, 4  ;;  %s34_s25 = int_to_ptr.vmem [resolvable:$true] %s33_s25  ;;  %s724_s27 = int_to_ptr.vmem [resolvable:$true] %s21_s27 }
   0x4   :  { %s581_s30 = scalar_lea.hbm %s801_s1, 2048 }
   0x5   :  { %p582_p0 = scmp.ne.s32.totalorder %s801_s1, %s581_s30  ;;  %p585_p1 = scmp.lt.u32.totalorder %s581_s30, %s801_s1 }
   0x7   :  { %p587_p2 = pnand %p585_p1, %p582_p0 }
   0x9   :  { %590 = shalt.err (!%p587_p2)
}
   0xa   :  { %s591_s12 = scalar_lea.vmem %s34_s25, 2048  ;;  %p596_p4 = scmp.lt.s32.totalorder %s34_s25, %s34_s25 }
   0xb   :  { %p592_p3 = scmp.ne.s32.totalorder %s34_s25, %s591_s12  ;;  %p597_p5 = scmp.lt.s32.totalorder %s591_s12, %s591_s12 }
   0xd   :  { %p598_p6 = por %p597_p5, %p596_p4 }
   0xf   :  { %p599_p7 = pnand %p598_p6, %p592_p3 }
  0x11   :  { %602 = shalt.err (!%p599_p7)
}
  0x12   :  { %s677_s13 = smov 128   ;;  %s678_s14 = smov 8  }
  0x13   :  { %39 = dma.hbm_to_vmem [thread:$0]  %s801_s1, 2048, %s34_s25, [#allocation7], %s677_s13, %s677_s13, %s678_s14  }
  0x14   :  { %s603_s19 = scalar_lea.hbm %s800_s0, 256 }
  0x15   :  { %p604_p8 = scmp.ne.s32.totalorder %s800_s0, %s603_s19  ;;  %p607_p9 = scmp.lt.u32.totalorder %s603_s19, %s800_s0 }
  0x17   :  { %p609_p10 = pnand %p607_p9, %p604_p8 }
  0x19   :  { %612 = shalt.err (!%p609_p10)
}
  0x1a   :  { %s613_s24 = scalar_lea.vmem %s724_s27, 256  ;;  %p618_p12 = scmp.lt.s32.totalorder %s724_s27, %s724_s27 }
  0x1b   :  { %p614_p11 = scmp.ne.s32.totalorder %s724_s27, %s613_s24  ;;  %p619_p13 = scmp.lt.s32.totalorder %s613_s24, %s613_s24 }
  0x1d   :  { %p620_p0 = por %p619_p13, %p618_p12 }
  0x1f   :  { %p621_p1 = pnand %p620_p0, %p614_p11 }
  0x21   :  { %624 = shalt.err (!%p621_p1)
}
  0x22   :  { %27 = dma.hbm_to_vmem [thread:$0]  %s800_s0, 256, %s724_s27, [#allocation4], %s677_s13, %s677_s13, %s678_s14  }
  0x23   :  { %s679_s26 = smov [#allocation8]   ;;  %s625_s8 = scalar_lea.hbm %s803_s3, 2048 }
  0x24   :  { %s47_s28 = sshll.u32 %s679_s26, 4  ;;  %p626_p2 = scmp.ne.s32.totalorder %s803_s3, %s625_s8  ;;  %s48_s28 = int_to_ptr.vmem [resolvable:$true] %s47_s28 }
  0x25   :  { %p629_p3 = scmp.lt.u32.totalorder %s625_s8, %s803_s3 }
  0x27   :  { %p631_p4 = pnand %p629_p3, %p626_p2 }
  0x29   :  { %634 = shalt.err (!%p631_p4)
}
  0x2a   :  { %s635_s15 = scalar_lea.vmem %s48_s28, 2048  ;;  %p640_p6 = scmp.lt.s32.totalorder %s48_s28, %s48_s28 }
  0x2b   :  { %p636_p5 = scmp.ne.s32.totalorder %s48_s28, %s635_s15  ;;  %p641_p7 = scmp.lt.s32.totalorder %s635_s15, %s635_s15 }
  0x2d   :  { %p642_p8 = por %p641_p7, %p640_p6 }
  0x2f   :  { %p643_p9 = pnand %p642_p8, %p636_p5 }
  0x31   :  { %646 = shalt.err (!%p643_p9)
}
  0x32   :  { %53 = dma.hbm_to_vmem [thread:$0]  %s803_s3, 2048, %s48_s28, [#allocation7], %s677_s13, %s677_s13, %s678_s14  }
  0x33   :  { %669 = dma.done.wait [#allocation4], 256  }
  0x34   :  { %670 = vsyncadd [#allocation4], 4294967040 }
  0x35   :  { %671 = dma.done.wait [#allocation7], 4096  }
  0x36   :  { %672 = vsyncadd [#allocation7], 4294963200  ;;  %v71_v0 = vld [vmem:[#allocation6] sm:$0xff]  ;;  %v72_v1 = vld [vmem:[#allocation6 + $0x8] sm:$0xff]  ;;  %vm681_vm0 = vmmov 0   ;;  %s683_s19 = smov [#allocation9]  }
  0x37   :  { %v73_v2 = vld [vmem:[#allocation6 + $0x10] sm:$0xff]  ;;  %v501_v3 = vpack.c.bf16 %v72_v1, %v71_v0  ;;  %v74_v4 = vld [vmem:[#allocation6 + $0x18] sm:$0xff]  ;;  %v75_v6 = vld [vmem:[#allocation6 + $0x20] sm:$0xff]  ;;  %s373_s20 = sshll.u32 %s683_s19, 4  ;;  %vm365_vm1 = vcmask 122880   ;;  %s374_s20 = int_to_ptr.vmem [resolvable:$true] %s373_s20 }
  0x38   :  { %v505_v5 = vpack.c.bf16 %v74_v4, %v73_v2  ;;  %v76_v7 = vld [vmem:[#allocation6 + $0x28] sm:$0xff]  ;;  %v77_v9 = vld [vmem:[#allocation6 + $0x30] sm:$0xff]  ;;  %v78_v10 = vld [vmem:[#allocation6 + $0x38] sm:$0xff]  ;;  %s647_s21 = scalar_lea.vmem %s374_s20, 16  ;;  %s651_s22 = scalar_lea.vmem %s374_s20, 32 }
  0x39   :  { %502 = vmatprep.subr.bf16.mxu0 %v501_v3  ;;  %v509_v8 = vpack.c.bf16 %v76_v7, %v75_v6  ;;  %v69_v11 = vld [vmem:[#allocation3] sm:$0xff]  ;;  %v171_v12 = vld [vmem:[#allocation8] sm:$0xff]  ;;  %v172_v13 = vld [vmem:[#allocation8 + $0x8] sm:$0xff]  ;;  %v513_v20 = vpack.c.bf16 %v78_v10, %v77_v9  ;;  %v680_v6 = vmov 0.0|0.0   ;;  %v682_v7 = vmov 0.0   ;;  %p648_p10 = scmp.ne.s32.totalorder %s374_s20, %s647_s21  ;;  %p652_p11 = scmp.lt.s32.totalorder %s374_s20, %s374_s20 }
  0x3a   :  { %504 = vmatpush3.bf16.msra.mxu0 %v501_v3  ;;  %456 = vmatprep.mubr.f32.mxu0 %v69_v11  ;;  %v173_v14 = vld [vmem:[#allocation8 + $0x10] sm:$0xff]  ;;  %v533_v15 = vpack.c.bf16 %v172_v13, %v171_v12  ;;  %v174_v16 = vld [vmem:[#allocation8 + $0x18] sm:$0xff]  ;;  %v175_v18 = vld [vmem:[#allocation8 + $0x20] sm:$0xff]  ;;  %p653_p12 = scmp.lt.s32.totalorder %s651_s22, %s647_s21 }
  0x3b   :  { %506 = vmatprep.subr.bf16.mxu0 %v505_v5  ;;  %v537_v17 = vpack.c.bf16 %v174_v16, %v173_v14  ;;  %v176_v19 = vld [vmem:[#allocation8 + $0x28] sm:$0xff]  ;;  %v79_v21 = vld [vmem:[#allocation6 + $0x40] sm:$0xff]  ;;  %v177_v24 = vld [vmem:[#allocation8 + $0x30] sm:$0xff] }
  0x3c   :  { %534 = vmatprep.subr.bf16.mxu1 %v533_v15  ;;  %v80_v22 = vld [vmem:[#allocation6 + $0x48] sm:$0xff]  ;;  %v541_v23 = vpack.c.bf16 %v176_v19, %v175_v18  ;;  %v178_v25 = vld [vmem:[#allocation8 + $0x38] sm:$0xff]  ;;  %v81_v27 = vld [vmem:[#allocation6 + $0x50] sm:$0xff]  ;;  %p654_p13 = por %p653_p12, %p652_p11 }
  0x3d   :  { %536 = vmatpush3.bf16.msra.mxu1 %v533_v15  ;;  %v517_v26 = vpack.c.bf16 %v80_v22, %v79_v21  ;;  %v82_v28 = vld [vmem:[#allocation6 + $0x58] sm:$0xff]  ;;  %v545_v29 = vpack.c.bf16 %v178_v25, %v177_v24  ;;  %v179_v30 = vld [vmem:[#allocation8 + $0x40] sm:$0xff]  ;;  %v180_v31 = vld [vmem:[#allocation8 + $0x48] sm:$0xff] }
  0x3e   :  { %508 = vmatpush3.bf16.msra.mxu0 %v505_v5  ;;  %538 = vmatprep.subr.bf16.mxu1 %v537_v17  ;;  %v521_v32 = vpack.c.bf16 %v82_v28, %v81_v27  ;;  %v83_v33 = vld [vmem:[#allocation6 + $0x60] sm:$0xff]  ;;  %v84_v34 = vld [vmem:[#allocation6 + $0x68] sm:$0xff]  ;;  %v549_v35 = vpack.c.bf16 %v180_v31, %v179_v30  ;;  %v181_v36 = vld [vmem:[#allocation8 + $0x50] sm:$0xff]  ;;  %p655_p0 = pnand %p654_p13, %p648_p10 }
  0x3f   :  { %510 = vmatprep.subr.bf16.mxu0 %v509_v8  ;;  %v182_v37 = vld [vmem:[#allocation8 + $0x58] sm:$0xff]  ;;  %v525_v38 = vpack.c.bf16 %v84_v34, %v83_v33  ;;  %v85_v39 = vld [vmem:[#allocation6 + $0x70] sm:$0xff]  ;;  %v183_v42 = vld [vmem:[#allocation8 + $0x60] sm:$0xff] }
  0x40   :  { %v86_v40 = vld [vmem:[#allocation6 + $0x78] sm:$0xff]  ;;  %v553_v41 = vpack.c.bf16 %v182_v37, %v181_v36  ;;  %v184_v43 = vld [vmem:[#allocation8 + $0x68] sm:$0xff]  ;;  %v185_v47 = vld [vmem:[#allocation8 + $0x70] sm:$0xff] }
  0x41   :  { %540 = vmatpush3.bf16.msra.mxu1 %v537_v17  ;;  %v529_v44 = vpack.c.bf16 %v86_v40, %v85_v39  ;;  %v557_v45 = vpack.c.bf16 %v184_v43, %v183_v42  ;;  %v70_v46 = vld [vmem:[#allocation3 + $0x8] sm:$0xff]  ;;  %v383_v50 = vld [vmem:[%s802_s2] ss:$0 sm:$0xff] }
  0x42   :  { %512 = vmatpush3.bf16.msra.mxu0 %v509_v8  ;;  %542 = vmatprep.subr.bf16.mxu1 %v541_v23  ;;  %v186_v48 = vld [vmem:[#allocation8 + $0x78] sm:$0xff]  ;;  %v384_v57 = vld [vmem:[%s804_s4] ss:$0 sm:$0xff] }
  0x43   :  { %514 = vmatprep.subr.bf16.mxu0 %v513_v20  ;;  %v561_v49 = vpack.c.bf16 %v186_v48, %v185_v47  ;;  %v292_v19 = vld [vmem:[%s805_s5] sm:$0x1] }
  0x45   :  { %544 = vmatpush3.bf16.msra.mxu1 %v541_v23 }
  0x46   :  { %516 = vmatpush3.bf16.msra.mxu0 %v513_v20  ;;  %546 = vmatprep.subr.bf16.mxu1 %v545_v29  ;;  %v294_v20 = vstv %s806_s6 }
  0x47   :  { %518 = vmatprep.subr.bf16.mxu0 %v517_v26 }
  0x49   :  { %548 = vmatpush3.bf16.msra.mxu1 %v545_v29 }
  0x4a   :  { %520 = vmatpush3.bf16.msra.mxu0 %v517_v26  ;;  %550 = vmatprep.subr.bf16.mxu1 %v549_v35 }
  0x4b   :  { %522 = vmatprep.subr.bf16.mxu0 %v521_v32 }
  0x4d   :  { %552 = vmatpush3.bf16.msra.mxu1 %v549_v35 }
  0x4e   :  { %524 = vmatpush3.bf16.msra.mxu0 %v521_v32  ;;  %554 = vmatprep.subr.bf16.mxu1 %v553_v41 }
  0x4f   :  { %526 = vmatprep.subr.bf16.mxu0 %v525_v38 }
  0x51   :  { %556 = vmatpush3.bf16.msra.mxu1 %v553_v41 }
  0x52   :  { %528 = vmatpush3.bf16.msra.mxu0 %v525_v38  ;;  %558 = vmatprep.subr.bf16.mxu1 %v557_v45 }
  0x53   :  { %530 = vmatprep.subr.bf16.mxu0 %v529_v44 }
  0x55   :  { %560 = vmatpush3.bf16.msra.mxu1 %v557_v45 }
  0x56   :  { %532 = vmatpush3.bf16.msra.mxu0 %v529_v44  ;;  %562 = vmatprep.subr.bf16.mxu1 %v561_v49 }
  0x57   :  { %565 = vmatprep.subr.bf16.mxu0 %v680_v6 }
  0x59   :  { %457 = vmatmul.mubr.f32.vlgmr.msra.gmra.mrb[0].mxu0 %v70_v46  ;;  %564 = vmatpush3.bf16.msra.mxu1 %v561_v49 }
  0x5a   :  { %498 = vmatprep.mubr.msk.f32.mxu0 %vm681_vm0, %v682_v7 }
 0x12c   :  { %v458_v51 = vpop.f32.mrb[0].mxu0 }
 0x12d   :  { %v166_v52 = vadd.f32 %v458_v51, %v383_v50  ;;  %v160_v53 = vpop.f32.mrb[1].mxu0 }
 0x12e   :  { %v161_v54 = vadd.f32 %v383_v50, %v160_v53 }
 0x12f   :  { %v170_v56 = vmax.f32 %v166_v52, 0.0 }
 0x130   :  { %v169_v55 = vmax.f32 %v161_v54, 0.0 }
 0x132   :  { %491 = vmatprep.mubr.f32.mxu1 %v169_v55 }
 0x133   :  { %492 = vmatmul.mubr.f32.vlgmr.msra.gmra.mrb[0].mxu1 %v170_v56 }
 0x206   :  { %v493_v58 = vpop.f32.mrb[0].mxu1 }
 0x207   :  { %v260_v59 = vpop.f32.mrb[1].mxu1  ;;  %v266_v61 = vadd.f32 %v493_v58, %v384_v57 }
 0x208   :  { %v261_v60 = vadd.f32 %v384_v57, %v260_v59 }
 0x20a   :  { %269 = vadd.xlane.f32.xlu0 %v261_v60 }
 0x20e   :  { %271 = vadd.xlane.f32.xlu0 %v266_v61 }
 0x297   :  { %v270_v62 = vpop.xlane.xlu0 %269 }
 0x298   :  { %v274_v63 = vmul.f32 0.0078125, %v270_v62 }
 0x29a   :  { %v276_v0 = vsub.f32 %v261_v60, %v274_v63 }
 0x29b   :  { %v272_v1 = vpop.xlane.xlu0 %271 }
 0x29c   :  { %v275_v2 = vmul.f32 0.0078125, %v272_v1  ;;  %v278_v3 = vmul.f32 %v276_v0, %v276_v0 }
 0x29e   :  { %v277_v4 = vsub.f32 %v266_v61, %v275_v2  ;;  %280 = vadd.xlane.f32.xlu1 %v278_v3 }
 0x2a0   :  { %v279_v5 = vmul.f32 %v277_v4, %v277_v4 }
 0x2a2   :  { %282 = vadd.xlane.f32.xlu1 %v279_v5 }
 0x32b   :  { %v281_v8 = vpop.xlane.xlu1 %280 }
 0x32c   :  { %v284_v9 = vmul.f32 0.0078125, %v281_v8 }
 0x32e   :  { %v286_v10 = vadd.f32 1e-05, %v284_v9 }
 0x32f   :  { %v283_v11 = vpop.xlane.xlu1 %282 }
 0x330   :  { %v285_v12 = vmul.f32 0.0078125, %v283_v11  ;;  %577 = vrsqrt.f32 %v286_v10 }
 0x332   :  { %v287_v13 = vadd.f32 1e-05, %v285_v12 }
 0x334   :  { %579 = vrsqrt.f32 %v287_v13 }
 0x33a   :  { %v578_v14 = vpop.eup %577 }
 0x33b   :  { %v290_v16 = vmul.f32 %v578_v14, %v276_v0 }
 0x33e   :  { %v580_v15 = vpop.eup %579 }
 0x33f   :  { %v291_v17 = vmul.f32 %v580_v15, %v277_v4 }
 0x341   :  { %v566_v18 = vpack.c.bf16 %v291_v17, %v290_v16 }
 0x343   :  { %567 = vmatpush3.bf16.xpose.msra.mxu0 %v566_v18 }
 0x34a   :  { %499 = vmatmul.mubr.f32.vlgmr.msra.gmra.mrb[2].mxu0 %v292_v19 }
 0x41d   :  { %v361_v21 = vpop.f32.mrb[2].mxu0 }
 0x41e   :  { %v362_v22 = vadd.f32 %v361_v21, %v294_v20  ;;  %v500_v23 = vpop.f32.mrb[3].mxu0 }
 0x420   :  { %366 = vst.msk [vmem:[#allocation9] sm:$0x1] %vm365_vm1, %v362_v22 }
 0x421   :  { %658 = shalt.err (!%p655_p0)
}
 0x422   :  { %s659_s6 = scalar_lea.hbm %s807_s7, 16 }
 0x423   :  { %p660_p1 = scmp.ne.s32.totalorder %s807_s7, %s659_s6  ;;  %p663_p2 = scmp.lt.u32.totalorder %s659_s6, %s807_s7 }
 0x425   :  { %p665_p3 = pnand %p663_p2, %p660_p1 }
 0x427   :  { %668 = shalt.err (!%p665_p3)
}
 0x428   :  { %376 = dma.vmem_to_hbm [thread:$0]  %s374_s20, 16, %s807_s7, [#allocation5]  }
 0x429   :  { %673 = dma.done.wait [#allocation5], 16  }
 0x42a   :  { %674 = vsyncadd [#allocation5], 4294967280 }
 0x42b   :  { %380 = vsyncpa [#allocation4], 1 }
 0x42c   :  { %381 = vsyncpa [#allocation7], 1 }
 0x42d   :  { %382 = vsyncpa [#allocation5], 1 }

</bundles_post_ra>
